<compile_context>
chip_gen: v5e
topology: v5e:2x2
jax: 0.10.0
libtpu: 0.0.40
codegen_flags: <defaults>
</compile_context>

<pallas_src>
import jax
import jax.numpy as jnp
from jax.experimental import pallas as pl
from jax.experimental.pallas import tpu as pltpu


MIN_STD_DEV = 0.1


def _round_up(x, m):
    return ((x + m - 1) // m) * m


def _inverse_dynamics_kernel(belief_ref, state_ref, nbelief_ref,
                             w1b_ref, w1s_ref, w1n_ref, b1_ref,
                             w2_ref, b2_ref,
                             w3_ref, b3_ref,
                             w4m_ref, b4m_ref,
                             w4s_ref, b4s_ref,
                             mean_ref, std_ref):
    f32 = jnp.float32
    cdt = w2_ref.dtype  # matmul operand dtype (f32 or bf16)

    # fc1 over the (virtually) concatenated input: three partial matmuls
    # against the pre-split weight slabs, fused with the bias add + relu.
    h = (jnp.dot(belief_ref[...], w1b_ref[...], preferred_element_type=f32)
         + jnp.dot(state_ref[...], w1s_ref[...], preferred_element_type=f32)
         + jnp.dot(nbelief_ref[...], w1n_ref[...], preferred_element_type=f32)
         + b1_ref[...])
    h = jnp.maximum(h, 0.0)

    # fc2 + relu
    h = jnp.dot(h.astype(cdt), w2_ref[...], preferred_element_type=f32) + b2_ref[...]
    h = jnp.maximum(h, 0.0)

    # fc3 + relu
    h = jnp.dot(h.astype(cdt), w3_ref[...], preferred_element_type=f32) + b3_ref[...]
    h = jnp.maximum(h, 0.0)
    h = h.astype(cdt)

    # fc4, split into two lane-dense heads (mean / raw std).
    mean = jnp.dot(h, w4m_ref[...], preferred_element_type=f32) + b4m_ref[...]
    raw_std = jnp.dot(h, w4s_ref[...], preferred_element_type=f32) + b4s_ref[...]

    # Numerically-stable softplus + min_std_dev, in f32 (exp on the EUP slot).
    std = (jnp.maximum(raw_std, 0.0)
           + jnp.log1p(jnp.exp(-jnp.abs(raw_std)))
           + MIN_STD_DEV)

    mean_ref[...] = mean.astype(mean_ref.dtype)
    std_ref[...] = std.astype(std_ref.dtype)


def inverse_dynamics_forward(belief, state, next_belief, params, action_size,
                             *, max_block_b=256, compute_dtype=jnp.float32):
    """Fused InverseDynamicsModel forward.  Returns (mean, std) in f32."""
    (w1b, w1s, w1n, b1, w2, b2, w3, b3, w4m, b4m, w4s, b4s) = params

    # Matmul operands in compute_dtype (f32 default, bf16 for real workloads);
    # biases stay f32 so the accumulate / epilogue stays full precision.
    belief = belief.astype(compute_dtype)
    state = state.astype(compute_dtype)
    next_belief = next_belief.astype(compute_dtype)
    weights = [w.astype(compute_dtype) for w in (w1b, w1s, w1n, w2, w3, w4m, w4s)]
    w1b, w1s, w1n, w2, w3, w4m, w4s = weights
    biases = [b.astype(jnp.float32) for b in (b1, b2, b3, b4m, b4s)]
    b1, b2, b3, b4m, b4s = biases

    batch = belief.shape[0]
    belief_size = belief.shape[1]
    state_size = state.shape[1]

    # Batch tile: multiple of 8 (sublane), capped so double-buffered activation
    # tiles + resident weights fit scoped VMEM comfortably on v5e/v6e/v7x.
    tb = min(max(max_block_b, 8), _round_up(batch, 8))
    tb = _round_up(tb, 8)
    padded_batch = _round_up(batch, tb)
    if padded_batch != batch:
        pad = padded_batch - batch
        belief = jnp.pad(belief, ((0, pad), (0, 0)))
        state = jnp.pad(state, ((0, pad), (0, 0)))
        next_belief = jnp.pad(next_belief, ((0, pad), (0, 0)))
    n_blocks = padded_batch // tb

    def act_spec(d):
        return pl.BlockSpec((tb, d), lambda i: (i, 0))

    def resident_spec(arr):
        # Full-extent block, constant block index -> DMA'd once, VMEM-resident.
        return pl.BlockSpec(arr.shape, lambda i: (0, 0))

    out_spec = pl.BlockSpec((tb, action_size), lambda i: (i, 0))

    # VMEM budget estimate: double-buffered activation/output tiles + weights
    # (counted twice for safety) + slack; clamp to [32 MiB, 64 MiB].
    itemsize = jnp.dtype(compute_dtype).itemsize
    act_bytes = 2 * tb * (2 * belief_size + state_size) * itemsize
    out_bytes = 2 * 2 * tb * action_size * 4
    w_bytes = 2 * sum(int(a.size) * a.dtype.itemsize
                      for a in (w1b, w1s, w1n, b1, w2, b2, w3, b3,
                                w4m, b4m, w4s, b4s))
    vmem_limit = min(64 << 20, max(32 << 20, act_bytes + out_bytes + w_bytes + (4 << 20)))

    mean, std = pl.pallas_call(
        _inverse_dynamics_kernel,
        grid=(n_blocks,),
        out_shape=(
            jax.ShapeDtypeStruct((padded_batch, action_size), jnp.float32),
            jax.ShapeDtypeStruct((padded_batch, action_size), jnp.float32),
        ),
        in_specs=[
            act_spec(belief_size), act_spec(state_size), act_spec(belief_size),
            resident_spec(w1b), resident_spec(w1s), resident_spec(w1n), resident_spec(b1),
            resident_spec(w2), resident_spec(b2),
            resident_spec(w3), resident_spec(b3),
            resident_spec(w4m), resident_spec(b4m),
            resident_spec(w4s), resident_spec(b4s),
        ],
        out_specs=(out_spec, out_spec),
        compiler_params=pltpu.CompilerParams(
            dimension_semantics=("parallel",),
            vmem_limit_bytes=int(vmem_limit)),
    )(belief, state, next_belief,
      w1b, w1s, w1n, b1, w2, b2, w3, b3, w4m, b4m, w4s, b4s)

    return mean[:batch], std[:batch]


def init_params(key, belief_size, state_size, action_size, hidden_size):
    """nn.Linear-style init (uniform +/- 1/sqrt(fan_in)).

    Returns (kernel_params, raw_params):
      kernel_params: fc1 split into per-input slabs, fc4 split into mean/std
                     heads (what the Pallas kernel consumes).
      raw_params:    unsplit (w1, b1, ..., w4, b4) for the pure-JAX reference.
    Weights are stored as (in_features, out_features)."""
    din = belief_size + state_size + belief_size
    dims = [
        (din, hidden_size),              # fc1
        (hidden_size, hidden_size),      # fc2
        (hidden_size, hidden_size),      # fc3
        (hidden_size, 2 * action_size),  # fc4
    ]
    raw = []
    for fan_in, fan_out in dims:
        key, kw, kb = jax.random.split(key, 3)
        bound = 1.0 / float(fan_in) ** 0.5
        w = jax.random.uniform(kw, (fan_in, fan_out), jnp.float32, -bound, bound)
        b = jax.random.uniform(kb, (1, fan_out), jnp.float32, -bound, bound)
        raw.extend([w, b])
    w1, b1, w2, b2, w3, b3, w4, b4 = raw

    # Split fc1 weight into per-input slabs (fuses torch.cat into the kernel).
    w1b = w1[:belief_size]
    w1s = w1[belief_size:belief_size + state_size]
    w1n = w1[belief_size + state_size:]
    # Split fc4 into separate mean / std heads (lane-dense outputs, no chunk).
    w4m, w4s = w4[:, :action_size], w4[:, action_size:]
    b4m, b4s = b4[:, :action_size], b4[:, action_size:]

    kernel_params = (w1b, w1s, w1n, b1, w2, b2, w3, b3, w4m, b4m, w4s, b4s)
    return kernel_params, tuple(raw)


if __name__ == "__main__":
    belief_size = 16
    state_size = 8
    action_size = 4
    hidden_size = 32
    batch = 2
    # TODO(synk): at these toy shapes (hidden=32, batch=2) the kernel is pure
    # launch/padding overhead; for real workloads fold timesteps into the batch
    # axis and pass compute_dtype=jnp.bfloat16.

    key = jax.random.PRNGKey(0)
    key, kb_, ks_, knb_ = jax.random.split(key, 4)
    belief = jax.random.normal(kb_, (batch, belief_size), jnp.float32)
    state = jax.random.normal(ks_, (batch, state_size), jnp.float32)
    next_belief = jax.random.normal(knb_, (batch, belief_size), jnp.float32)

    kernel_params, raw_params = init_params(
        key, belief_size, state_size, action_size, hidden_size)

    mean, std = inverse_dynamics_forward(
        belief, state, next_belief, kernel_params, action_size)
    jax.block_until_ready((mean, std))

    # Pure-JAX reference (matches the PyTorch module semantics).
    w1, b1, w2, b2, w3, b3, w4, b4 = raw_params
    x = jnp.concatenate((belief, state, next_belief), axis=1)
    h = jax.nn.relu(x @ w1 + b1)
    h = jax.nn.relu(h @ w2 + b2)
    h = jax.nn.relu(h @ w3 + b3)
    out = h @ w4 + b4
    ref_mean, ref_raw = out[:, :action_size], out[:, action_size:]
    ref_std = jax.nn.softplus(ref_raw) + MIN_STD_DEV

    assert jnp.allclose(mean, ref_mean, atol=1e-5, rtol=1e-5)
    assert jnp.allclose(std, ref_std, atol=1e-5, rtol=1e-5)

    print("KERNEL_OK")
</pallas_src>

<mosaic_0001>
module attributes {stable_mosaic.version = 11 : i64} {
  func.func @_inverse_dynamics_kernel(%arg0: i32, %arg1: memref<8x16xf32, #tpu.memory_space<vmem>>, %arg2: memref<8x8xf32, #tpu.memory_space<vmem>>, %arg3: memref<8x16xf32, #tpu.memory_space<vmem>>, %arg4: memref<16x32xf32, #tpu.memory_space<vmem>>, %arg5: memref<8x32xf32, #tpu.memory_space<vmem>>, %arg6: memref<16x32xf32, #tpu.memory_space<vmem>>, %arg7: memref<1x32xf32, #tpu.memory_space<vmem>>, %arg8: memref<32x32xf32, #tpu.memory_space<vmem>>, %arg9: memref<1x32xf32, #tpu.memory_space<vmem>>, %arg10: memref<32x32xf32, #tpu.memory_space<vmem>>, %arg11: memref<1x32xf32, #tpu.memory_space<vmem>>, %arg12: memref<32x4xf32, #tpu.memory_space<vmem>>, %arg13: memref<1x4xf32, #tpu.memory_space<vmem>>, %arg14: memref<32x4xf32, #tpu.memory_space<vmem>>, %arg15: memref<1x4xf32, #tpu.memory_space<vmem>>, %arg16: memref<8x4xf32, #tpu.memory_space<vmem>>, %arg17: memref<8x4xf32, #tpu.memory_space<vmem>>) attributes {dimension_semantics = [#tpu.dimension_semantics<parallel>], iteration_bounds = array<i64: 1>, scalar_prefetch = 0 : i64, scratch_operands = 0 : i64, tpu.core_type = #tpu.core_type<tc>, window_params = [{transform_indices = @transform_0, window_bounds = array<i64: 8, 16>}, {transform_indices = @transform_1, window_bounds = array<i64: 8, 8>}, {transform_indices = @transform_2, window_bounds = array<i64: 8, 16>}, {pipeline_mode = #tpu.pipeline_mode<synchronous>, transform_indices = @transform_3, window_bounds = array<i64: 16, 32>}, {pipeline_mode = #tpu.pipeline_mode<synchronous>, transform_indices = @transform_4, window_bounds = array<i64: 8, 32>}, {pipeline_mode = #tpu.pipeline_mode<synchronous>, transform_indices = @transform_5, window_bounds = array<i64: 16, 32>}, {pipeline_mode = #tpu.pipeline_mode<synchronous>, transform_indices = @transform_6, window_bounds = array<i64: 1, 32>}, {pipeline_mode = #tpu.pipeline_mode<synchronous>, transform_indices = @transform_7, window_bounds = array<i64: 32, 32>}, {pipeline_mode = #tpu.pipeline_mode<synchronous>, transform_indices = @transform_8, window_bounds = array<i64: 1, 32>}, {pipeline_mode = #tpu.pipeline_mode<synchronous>, transform_indices = @transform_9, window_bounds = array<i64: 32, 32>}, {pipeline_mode = #tpu.pipeline_mode<synchronous>, transform_indices = @transform_10, window_bounds = array<i64: 1, 32>}, {pipeline_mode = #tpu.pipeline_mode<synchronous>, transform_indices = @transform_11, window_bounds = array<i64: 32, 4>}, {pipeline_mode = #tpu.pipeline_mode<synchronous>, transform_indices = @transform_12, window_bounds = array<i64: 1, 4>}, {pipeline_mode = #tpu.pipeline_mode<synchronous>, transform_indices = @transform_13, window_bounds = array<i64: 32, 4>}, {pipeline_mode = #tpu.pipeline_mode<synchronous>, transform_indices = @transform_14, window_bounds = array<i64: 1, 4>}, {transform_indices = @transform_15, window_bounds = array<i64: 8, 4>}, {transform_indices = @transform_16, window_bounds = array<i64: 8, 4>}]} {
    %c0 = arith.constant 0 : index
    %c0_0 = arith.constant 0 : index
    %0 = vector.load %arg1[%c0, %c0_0] : memref<8x16xf32, #tpu.memory_space<vmem>>, vector<8x16xf32>
    %c0_1 = arith.constant 0 : index
    %c0_2 = arith.constant 0 : index
    %1 = vector.load %arg4[%c0_1, %c0_2] : memref<16x32xf32, #tpu.memory_space<vmem>>, vector<16x32xf32>
    %cst = arith.constant dense<0.000000e+00> : vector<8x32xf32>
    %2 = tpu.matmul %0, %1, %cst {dimension_numbers = #tpu.dot_dimension_numbers<[1], [0], [0], [1], [0, 0, 1, 1], [], []>} : vector<8x16xf32>, vector<16x32xf32>, vector<8x32xf32> -> vector<8x32xf32>
    %c0_3 = arith.constant 0 : index
    %c0_4 = arith.constant 0 : index
    %3 = vector.load %arg2[%c0_3, %c0_4] : memref<8x8xf32, #tpu.memory_space<vmem>>, vector<8x8xf32>
    %c0_5 = arith.constant 0 : index
    %c0_6 = arith.constant 0 : index
    %4 = vector.load %arg5[%c0_5, %c0_6] : memref<8x32xf32, #tpu.memory_space<vmem>>, vector<8x32xf32>
    %cst_7 = arith.constant dense<0.000000e+00> : vector<8x32xf32>
    %5 = tpu.matmul %3, %4, %cst_7 {dimension_numbers = #tpu.dot_dimension_numbers<[1], [0], [0], [1], [0, 0, 1, 1], [], []>} : vector<8x8xf32>, vector<8x32xf32>, vector<8x32xf32> -> vector<8x32xf32>
    %6 = arith.addf %2, %5 : vector<8x32xf32>
    %c0_8 = arith.constant 0 : index
    %c0_9 = arith.constant 0 : index
    %7 = vector.load %arg3[%c0_8, %c0_9] : memref<8x16xf32, #tpu.memory_space<vmem>>, vector<8x16xf32>
    %c0_10 = arith.constant 0 : index
    %c0_11 = arith.constant 0 : index
    %8 = vector.load %arg6[%c0_10, %c0_11] : memref<16x32xf32, #tpu.memory_space<vmem>>, vector<16x32xf32>
    %cst_12 = arith.constant dense<0.000000e+00> : vector<8x32xf32>
    %9 = tpu.matmul %7, %8, %cst_12 {dimension_numbers = #tpu.dot_dimension_numbers<[1], [0], [0], [1], [0, 0, 1, 1], [], []>} : vector<8x16xf32>, vector<16x32xf32>, vector<8x32xf32> -> vector<8x32xf32>
    %10 = arith.addf %6, %9 : vector<8x32xf32>
    %c0_13 = arith.constant 0 : index
    %c0_14 = arith.constant 0 : index
    %11 = vector.load %arg7[%c0_13, %c0_14] : memref<1x32xf32, #tpu.memory_space<vmem>>, vector<1x32xf32>
    %12 = vector.broadcast %11 : vector<1x32xf32> to vector<8x32xf32>
    %13 = arith.addf %10, %12 : vector<8x32xf32>
    %cst_15 = arith.constant 0.000000e+00 : f32
    %14 = vector.broadcast %cst_15 : f32 to vector<8x32xf32>
    %15 = arith.maximumf %13, %14 : vector<8x32xf32>
    %c0_16 = arith.constant 0 : index
    %c0_17 = arith.constant 0 : index
    %16 = vector.load %arg8[%c0_16, %c0_17] : memref<32x32xf32, #tpu.memory_space<vmem>>, vector<32x32xf32>
    %cst_18 = arith.constant dense<0.000000e+00> : vector<8x32xf32>
    %17 = tpu.matmul %15, %16, %cst_18 {dimension_numbers = #tpu.dot_dimension_numbers<[1], [0], [0], [1], [0, 0, 1, 1], [], []>} : vector<8x32xf32>, vector<32x32xf32>, vector<8x32xf32> -> vector<8x32xf32>
    %c0_19 = arith.constant 0 : index
    %c0_20 = arith.constant 0 : index
    %18 = vector.load %arg9[%c0_19, %c0_20] : memref<1x32xf32, #tpu.memory_space<vmem>>, vector<1x32xf32>
    %19 = vector.broadcast %18 : vector<1x32xf32> to vector<8x32xf32>
    %20 = arith.addf %17, %19 : vector<8x32xf32>
    %cst_21 = arith.constant 0.000000e+00 : f32
    %21 = vector.broadcast %cst_21 : f32 to vector<8x32xf32>
    %22 = arith.maximumf %20, %21 : vector<8x32xf32>
    %c0_22 = arith.constant 0 : index
    %c0_23 = arith.constant 0 : index
    %23 = vector.load %arg10[%c0_22, %c0_23] : memref<32x32xf32, #tpu.memory_space<vmem>>, vector<32x32xf32>
    %cst_24 = arith.constant dense<0.000000e+00> : vector<8x32xf32>
    %24 = tpu.matmul %22, %23, %cst_24 {dimension_numbers = #tpu.dot_dimension_numbers<[1], [0], [0], [1], [0, 0, 1, 1], [], []>} : vector<8x32xf32>, vector<32x32xf32>, vector<8x32xf32> -> vector<8x32xf32>
    %c0_25 = arith.constant 0 : index
    %c0_26 = arith.constant 0 : index
    %25 = vector.load %arg11[%c0_25, %c0_26] : memref<1x32xf32, #tpu.memory_space<vmem>>, vector<1x32xf32>
    %26 = vector.broadcast %25 : vector<1x32xf32> to vector<8x32xf32>
    %27 = arith.addf %24, %26 : vector<8x32xf32>
    %cst_27 = arith.constant 0.000000e+00 : f32
    %28 = vector.broadcast %cst_27 : f32 to vector<8x32xf32>
    %29 = arith.maximumf %27, %28 : vector<8x32xf32>
    %c0_28 = arith.constant 0 : index
    %c0_29 = arith.constant 0 : index
    %30 = vector.load %arg12[%c0_28, %c0_29] : memref<32x4xf32, #tpu.memory_space<vmem>>, vector<32x4xf32>
    %cst_30 = arith.constant dense<0.000000e+00> : vector<8x4xf32>
    %31 = tpu.matmul %29, %30, %cst_30 {dimension_numbers = #tpu.dot_dimension_numbers<[1], [0], [0], [1], [0, 0, 1, 1], [], []>} : vector<8x32xf32>, vector<32x4xf32>, vector<8x4xf32> -> vector<8x4xf32>
    %c0_31 = arith.constant 0 : index
    %c0_32 = arith.constant 0 : index
    %32 = vector.load %arg13[%c0_31, %c0_32] : memref<1x4xf32, #tpu.memory_space<vmem>>, vector<1x4xf32>
    %33 = vector.broadcast %32 : vector<1x4xf32> to vector<8x4xf32>
    %34 = arith.addf %31, %33 : vector<8x4xf32>
    %c0_33 = arith.constant 0 : index
    %c0_34 = arith.constant 0 : index
    %35 = vector.load %arg14[%c0_33, %c0_34] : memref<32x4xf32, #tpu.memory_space<vmem>>, vector<32x4xf32>
    %cst_35 = arith.constant dense<0.000000e+00> : vector<8x4xf32>
    %36 = tpu.matmul %29, %35, %cst_35 {dimension_numbers = #tpu.dot_dimension_numbers<[1], [0], [0], [1], [0, 0, 1, 1], [], []>} : vector<8x32xf32>, vector<32x4xf32>, vector<8x4xf32> -> vector<8x4xf32>
    %c0_36 = arith.constant 0 : index
    %c0_37 = arith.constant 0 : index
    %37 = vector.load %arg15[%c0_36, %c0_37] : memref<1x4xf32, #tpu.memory_space<vmem>>, vector<1x4xf32>
    %38 = vector.broadcast %37 : vector<1x4xf32> to vector<8x4xf32>
    %39 = arith.addf %36, %38 : vector<8x4xf32>
    %cst_38 = arith.constant 0.000000e+00 : f32
    %40 = vector.broadcast %cst_38 : f32 to vector<8x4xf32>
    %41 = arith.maximumf %39, %40 : vector<8x4xf32>
    %42 = math.absf %39 : vector<8x4xf32>
    %cst_39 = arith.constant 0.000000e+00 : f32
    %43 = vector.broadcast %cst_39 : f32 to vector<8x4xf32>
    %44 = arith.subf %43, %42 : vector<8x4xf32>
    %45 = math.exp %44 : vector<8x4xf32>
    %46 = math.log1p %45 : vector<8x4xf32>
    %47 = arith.addf %41, %46 : vector<8x4xf32>
    %cst_40 = arith.constant 1.000000e-01 : f32
    %48 = vector.broadcast %cst_40 : f32 to vector<8x4xf32>
    %49 = arith.addf %47, %48 : vector<8x4xf32>
    %c0_41 = arith.constant 0 : index
    %c0_42 = arith.constant 0 : index
    %50 = vector.load %arg16[%c0_41, %c0_42] : memref<8x4xf32, #tpu.memory_space<vmem>>, vector<8x4xf32>
    tpu.vector_store %arg16[%c0_41, %c0_42], %34 {strides = array<i32>} : memref<8x4xf32, #tpu.memory_space<vmem>>, vector<8x4xf32>,
    %c0_43 = arith.constant 0 : index
    %c0_44 = arith.constant 0 : index
    %51 = vector.load %arg17[%c0_43, %c0_44] : memref<8x4xf32, #tpu.memory_space<vmem>>, vector<8x4xf32>
    tpu.vector_store %arg17[%c0_43, %c0_44], %49 {strides = array<i32>} : memref<8x4xf32, #tpu.memory_space<vmem>>, vector<8x4xf32>,
    return
  }
  func.func @transform_0(%arg0: i32) -> (i32, i32) {
    %c0_i32 = arith.constant 0 : i32
    %c0_i32_0 = arith.constant 0 : i32
    return %arg0, %c0_i32 : i32, i32
  }
  func.func @transform_1(%arg0: i32) -> (i32, i32) {
    %c0_i32 = arith.constant 0 : i32
    %c0_i32_0 = arith.constant 0 : i32
    return %arg0, %c0_i32 : i32, i32
  }
  func.func @transform_2(%arg0: i32) -> (i32, i32) {
    %c0_i32 = arith.constant 0 : i32
    %c0_i32_0 = arith.constant 0 : i32
    return %arg0, %c0_i32 : i32, i32
  }
  func.func @transform_3(%arg0: i32) -> (i32, i32) {
    %c0_i32 = arith.constant 0 : i32
    %c0_i32_0 = arith.constant 0 : i32
    %c0_i32_1 = arith.constant 0 : i32
    return %c0_i32, %c0_i32_0 : i32, i32
  }
  func.func @transform_4(%arg0: i32) -> (i32, i32) {
    %c0_i32 = arith.constant 0 : i32
    %c0_i32_0 = arith.constant 0 : i32
    %c0_i32_1 = arith.constant 0 : i32
    return %c0_i32, %c0_i32_0 : i32, i32
  }
  func.func @transform_5(%arg0: i32) -> (i32, i32) {
    %c0_i32 = arith.constant 0 : i32
    %c0_i32_0 = arith.constant 0 : i32
    %c0_i32_1 = arith.constant 0 : i32
    return %c0_i32, %c0_i32_0 : i32, i32
  }
  func.func @transform_6(%arg0: i32) -> (i32, i32) {
    %c0_i32 = arith.constant 0 : i32
    %c0_i32_0 = arith.constant 0 : i32
    %c0_i32_1 = arith.constant 0 : i32
    return %c0_i32, %c0_i32_0 : i32, i32
  }
  func.func @transform_7(%arg0: i32) -> (i32, i32) {
    %c0_i32 = arith.constant 0 : i32
    %c0_i32_0 = arith.constant 0 : i32
    %c0_i32_1 = arith.constant 0 : i32
    return %c0_i32, %c0_i32_0 : i32, i32
  }
  func.func @transform_8(%arg0: i32) -> (i32, i32) {
    %c0_i32 = arith.constant 0 : i32
    %c0_i32_0 = arith.constant 0 : i32
    %c0_i32_1 = arith.constant 0 : i32
    return %c0_i32, %c0_i32_0 : i32, i32
  }
  func.func @transform_9(%arg0: i32) -> (i32, i32) {
    %c0_i32 = arith.constant 0 : i32
    %c0_i32_0 = arith.constant 0 : i32
    %c0_i32_1 = arith.constant 0 : i32
    return %c0_i32, %c0_i32_0 : i32, i32
  }
  func.func @transform_10(%arg0: i32) -> (i32, i32) {
    %c0_i32 = arith.constant 0 : i32
    %c0_i32_0 = arith.constant 0 : i32
    %c0_i32_1 = arith.constant 0 : i32
    return %c0_i32, %c0_i32_0 : i32, i32
  }
  func.func @transform_11(%arg0: i32) -> (i32, i32) {
    %c0_i32 = arith.constant 0 : i32
    %c0_i32_0 = arith.constant 0 : i32
    %c0_i32_1 = arith.constant 0 : i32
    return %c0_i32, %c0_i32_0 : i32, i32
  }
  func.func @transform_12(%arg0: i32) -> (i32, i32) {
    %c0_i32 = arith.constant 0 : i32
    %c0_i32_0 = arith.constant 0 : i32
    %c0_i32_1 = arith.constant 0 : i32
    return %c0_i32, %c0_i32_0 : i32, i32
  }
  func.func @transform_13(%arg0: i32) -> (i32, i32) {
    %c0_i32 = arith.constant 0 : i32
    %c0_i32_0 = arith.constant 0 : i32
    %c0_i32_1 = arith.constant 0 : i32
    return %c0_i32, %c0_i32_0 : i32, i32
  }
  func.func @transform_14(%arg0: i32) -> (i32, i32) {
    %c0_i32 = arith.constant 0 : i32
    %c0_i32_0 = arith.constant 0 : i32
    %c0_i32_1 = arith.constant 0 : i32
    return %c0_i32, %c0_i32_0 : i32, i32
  }
  func.func @transform_15(%arg0: i32) -> (i32, i32) {
    %c0_i32 = arith.constant 0 : i32
    %c0_i32_0 = arith.constant 0 : i32
    return %arg0, %c0_i32 : i32, i32
  }
  func.func @transform_16(%arg0: i32) -> (i32, i32) {
    %c0_i32 = arith.constant 0 : i32
    %c0_i32_0 = arith.constant 0 : i32
    return %arg0, %c0_i32 : i32, i32
  }
}

</mosaic_0001>

<bundles_post_ra>
// kernel: tpu_custom_call.1
= control target key start
LH: loop header
LB: loop body
LE: loop exit
PB: predicated region body
PF: predicated region fallthrough
CT: control target
= control target key end

     0   :  { %s741_s0 = inlined_call_operand.hbm [shape: f32[8,16], index: 0, kind: input, shape index: {}]   ;;  %s742_s1 = inlined_call_operand.hbm [shape: f32[8,8], index: 1, kind: input, shape index: {}]   ;;  %s743_s2 = inlined_call_operand.hbm [shape: f32[8,16], index: 2, kind: input, shape index: {}]   ;;  %s744_s3 = inlined_call_operand.hbm [shape: f32[16,32], index: 3, kind: input, shape index: {}]   ;;  %s745_s4 = inlined_call_operand.hbm [shape: f32[8,32], index: 4, kind: input, shape index: {}]   ;;  %s746_s5 = inlined_call_operand.hbm [shape: f32[16,32], index: 5, kind: input, shape index: {}]   ;;  %s747_s6 = inlined_call_operand.vmem [shape: f32[1,32], index: 6, kind: input, shape index: {}]   ;;  %s748_s7 = inlined_call_operand.vmem [shape: f32[32,32], index: 7, kind: input, shape index: {}]   ;;  %s749_s8 = inlined_call_operand.vmem [shape: f32[1,32], index: 8, kind: input, shape index: {}]   ;;  %s750_s9 = inlined_call_operand.vmem [shape: f32[32,32], index: 9, kind: input, shape index: {}]   ;;  %s751_s10 = inlined_call_operand.vmem [shape: f32[1,32], index: 10, kind: input, shape index: {}]   ;;  %s752_s11 = inlined_call_operand.vmem [shape: f32[32,4], index: 11, kind: input, shape index: {}]   ;;  %s753_s12 = inlined_call_operand.vmem [shape: f32[1,4], index: 12, kind: input, shape index: {}]   ;;  %s754_s13 = inlined_call_operand.vmem [shape: f32[32,4], index: 13, kind: input, shape index: {}]   ;;  %s755_s14 = inlined_call_operand.vmem [shape: f32[1,4], index: 14, kind: input, shape index: {}]   ;;  %s756_s15 = inlined_call_operand.vmem [shape: f32[8,4], index: 15, kind: output, shape index: {0}]   ;;  %s757_s16 = inlined_call_operand.vmem [shape: f32[8,4], index: 16, kind: output, shape index: {1}]  }
   0x1   :  { %758 = sst [smem:[#allocation16_spill]] %s741_s0 }
   0x2   :  { %759 = sst [smem:[#allocation17_spill]] %s757_s16 }
   0x3   :  { %22 = vsyncpa [#allocation3], 0 }
   0x4   :  { %23 = vsyncpa [#allocation5], 0 }
   0x5   :  { %24 = vsyncpa [#allocation8], 0  ;;  %s42_s23 = sshll.u32 %s742_s1, 4  ;;  %s43_s23 = int_to_ptr.hbm [resolvable:$true] %s42_s23 }
   0x6   :  { %25 = vsyncpa [#allocation11], 0  ;;  %s555_s24 = smov [#allocation4]   ;;  %s63_s28 = sshll.u32 %s744_s3, 4  ;;  %s64_s28 = int_to_ptr.hbm [resolvable:$true] %s63_s28 }
   0x7   :  { %s44_s25 = sshll.u32 %s555_s24, 4  ;;  %s556_s29 = smov [#allocation7]   ;;  %s45_s25 = int_to_ptr.vmem [resolvable:$true] %s44_s25 }
   0x8   :  { %47 = dma.hbm_to_vmem [thread:$0]  %s43_s23, 128, %s45_s25, [#allocation5]  }
   0x9   :  { %s65_s30 = sshll.u32 %s556_s29, 4  ;;  %s557_s0 = smov 128   ;;  %s66_s30 = int_to_ptr.vmem [resolvable:$true] %s65_s30 }
   0xa   :  { %s558_s17 = smov 8   ;;  %s760_s1 = sld [smem:[#allocation16_spill]] }
   0xb   :  { %71 = dma.hbm_to_vmem [thread:$0]  %s64_s28, 256, %s66_s30, [#allocation8], %s557_s0, %s557_s0, %s558_s17  }
   0xc   :  { %s559_s21 = smov [#allocation2]   ;;  %s53_s3 = sshll.u32 %s743_s2, 4  ;;  %s54_s3 = int_to_ptr.hbm [resolvable:$true] %s53_s3 }
   0xd   :  { %s33_s22 = sshll.u32 %s559_s21, 4  ;;  %s560_s23 = smov [#allocation6]   ;;  %s34_s22 = int_to_ptr.vmem [resolvable:$true] %s33_s22 }
   0xe   :  { %s55_s25 = sshll.u32 %s560_s23, 4  ;;  %s77_s28 = sshll.u32 %s745_s4, 4  ;;  %s56_s25 = int_to_ptr.vmem [resolvable:$true] %s55_s25  ;;  %s78_s28 = int_to_ptr.hbm [resolvable:$true] %s77_s28 }
   0xf   :  { %58 = dma.hbm_to_vmem [thread:$0]  %s54_s3, 128, %s56_s25, [#allocation5]  }
  0x10   :  { %s31_s20 = sshll.u32 %s760_s1, 4  ;;  %s87_s18 = sshll.u32 %s746_s5, 4  ;;  %s32_s20 = int_to_ptr.hbm [resolvable:$true] %s31_s20  ;;  %s88_s18 = int_to_ptr.hbm [resolvable:$true] %s87_s18 }
  0x11   :  { %36 = dma.hbm_to_vmem [thread:$0]  %s32_s20, 128, %s34_s22, [#allocation3]  }
  0x12   :  { %s561_s19 = smov [#allocation9]   ;;  %s562_s2 = smov [#allocation10]  }
  0x13   :  { %s79_s1 = sshll.u32 %s561_s19, 4  ;;  %s89_s16 = sshll.u32 %s562_s2, 4  ;;  %s80_s1 = int_to_ptr.vmem [resolvable:$true] %s79_s1  ;;  %s90_s16 = int_to_ptr.vmem [resolvable:$true] %s89_s16 }
  0x14   :  { %82 = dma.hbm_to_vmem [thread:$0]  %s78_s28, 128, %s80_s1, [#allocation8]  }
  0x15   :  { %95 = dma.hbm_to_vmem [thread:$0]  %s88_s18, 256, %s90_s16, [#allocation11], %s557_s0, %s557_s0, %s558_s17  }
  0x16   :  { %547 = dma.done.wait [#allocation3], 128  }
  0x17   :  { %548 = vsyncadd [#allocation3], 4294967168 }
  0x18   :  { %549 = dma.done.wait [#allocation5], 256  }
  0x19   :  { %550 = vsyncadd [#allocation5], 4294967040 }
  0x1a   :  { %551 = dma.done.wait [#allocation8], 384  }
  0x1b   :  { %552 = vsyncadd [#allocation8], 4294966912 }
  0x1c   :  { %553 = dma.done.wait [#allocation11], 256  }
  0x1d   :  { %554 = vsyncadd [#allocation11], 4294967040  ;;  %v193_v0 = vld [vmem:[#allocation10 + $0x8] sm:$0xff]  ;;  %v192_v1 = vld [vmem:[#allocation10] sm:$0xff]  ;;  %vm143_vm0 = vcmask 64512   ;;  %vm167_vm1 = vcmask 130048  }
  0x1e   :  { %v191_v2 = vld [vmem:[#allocation6] sm:$0xff]  ;;  %211 = vmatpush.msra.mxu2 %v193_v0  ;;  %v140_v3 = vld [vmem:[#allocation7 + $0x8] sm:$0xff]  ;;  %v142_v4 = vld [vmem:[#allocation9] sm:$0xff]  ;;  %vm232_vm2 = vcmask 261120   ;;  %vm364_vm3 = vcmask 31744  }
  0x1f   :  { %v139_v5 = vld [vmem:[#allocation7] sm:$0xff]  ;;  %185 = vmatpush.msra.mxu1 %v140_v3  ;;  %162 = vmatpush.msra.mxu0 %v142_v4  ;;  %v141_v6 = vld [vmem:[#allocation4] sm:$0xff]  ;;  %v138_v7 = vld [vmem:[#allocation2] sm:$0xff] }
  0x20   :  { %212 = vmatpush.msra.mxu2 %v192_v1  ;;  %379 = vmatmul.msk.f32.vlgmr.msra.gmra.mxu0 %vm143_vm0, %v141_v6  ;;  %v227_v8 = vld [vmem:[%s748_s7 + $0x18] sm:$0xff]  ;;  %v226_v9 = vld [vmem:[%s748_s7 + $0x10] sm:$0xff]  ;;  %v225_v10 = vld [vmem:[%s748_s7 + $0x8] sm:$0xff] }
  0x21   :  { %381 = vmatmul.msk.f32.vlgmr.msra.gmra.mxu2 %vm167_vm1, %v191_v2  ;;  %186 = vmatpush.msra.mxu1 %v139_v5  ;;  %v224_v11 = vld [vmem:[%s748_s7] sm:$0xff]  ;;  %v260_v12 = vld [vmem:[%s750_s9 + $0x18] sm:$0xff]  ;;  %v259_v13 = vld [vmem:[%s750_s9 + $0x10] sm:$0xff] }
  0x22   :  { %380 = vmatmul.msk.f32.vlgmr.msra.gmra.mxu1 %vm167_vm1, %v138_v7  ;;  %248 = vmatpush.msra.mxu3 %v227_v8  ;;  %v394_v17 = vld [vmem:[%s747_s6] ss:$0 sm:$0xff]  ;;  %v258_v22 = vld [vmem:[%s750_s9 + $0x8] sm:$0xff]  ;;  %v323_v24 = vld [vmem:[%s754_s13 + $0x18] sm:$0xff] }
  0x23   :  { %280 = vmatpush.msrb.mxu0 %v260_v12  ;;  %v257_v23 = vld [vmem:[%s750_s9] sm:$0xff]  ;;  %v292_v25 = vld [vmem:[%s752_s11 + $0x18] sm:$0xff]  ;;  %v322_v26 = vld [vmem:[%s754_s13 + $0x10] sm:$0xff]  ;;  %340 = vmatpush.msrb.mxu2 %v323_v24 }
  0x24   :  { %249 = vmatpush.msra.mxu3 %v226_v9  ;;  %312 = vmatpush.msrb.mxu1 %v292_v25  ;;  %v395_v27 = vld [vmem:[%s749_s8] ss:$0 sm:$0xff]  ;;  %v291_v31 = vld [vmem:[%s752_s11 + $0x10] sm:$0xff]  ;;  %v321_v32 = vld [vmem:[%s754_s13 + $0x8] sm:$0xff] }
  0x25   :  { %281 = vmatpush.msrb.mxu0 %v259_v13  ;;  %341 = vmatpush.msrb.mxu2 %v322_v26  ;;  %v290_v33 = vld [vmem:[%s752_s11 + $0x8] sm:$0xff]  ;;  %v320_v34 = vld [vmem:[%s754_s13] sm:$0xff] }
  0x26   :  { %250 = vmatpush.msra.mxu3 %v225_v10  ;;  %313 = vmatpush.msrb.mxu1 %v291_v31  ;;  %v289_v35 = vld [vmem:[%s752_s11] sm:$0xff] }
  0x27   :  { %282 = vmatpush.msrb.mxu0 %v258_v22  ;;  %342 = vmatpush.msrb.mxu2 %v321_v32  ;;  %v396_v36 = vld [vmem:[%s751_s10] ss:$0 sm:$0xff] }
  0x28   :  { %251 = vmatpush.msra.mxu3 %v224_v11  ;;  %314 = vmatpush.msrb.mxu1 %v290_v33  ;;  %v397_v40 = vld [vmem:[%s753_s12] ss:$0 sm:$0xff] }
  0x29   :  { %283 = vmatpush.msrb.mxu0 %v257_v23  ;;  %343 = vmatpush.msrb.mxu2 %v320_v34  ;;  %v398_v43 = vld [vmem:[%s755_s14] ss:$0 sm:$0xff] }
  0x2a   :  { %315 = vmatpush.msrb.mxu1 %v289_v35 }
  0x9d   :  { %v164_v14 = vpop.f32.mrf.mxu0 }
  0x9f   :  { %v188_v15 = vpop.f32.mrf.mxu1 }
  0xa0   :  { %v189_v16 = vadd.f32 %v188_v15, %v164_v14 }
  0xa4   :  { %v214_v18 = vpop.f32.mrf.mxu2 }
  0xa5   :  { %v217_v19 = vadd.f32 %v214_v18, %v189_v16 }
  0xa7   :  { %v222_v20 = vadd.f32 %v394_v17, %v217_v19 }
  0xa9   :  { %v223_v21 = vmax.f32 %v222_v20, 0.0 }
  0xab   :  { %382 = vmatmul.msk.f32.vlgmr.msra.gmra.mxu3 %vm232_vm2, %v223_v21 }
 0x12e   :  { %v253_v28 = vpop.f32.mrf.mxu3 }
 0x12f   :  { %v254_v29 = vadd.f32 %v395_v27, %v253_v28 }
 0x131   :  { %v256_v30 = vmax.f32 %v254_v29, 0.0 }
 0x133   :  { %383 = vmatmul.msk.f32.vlgmr.msrb.gmra.mxu0 %vm232_vm2, %v256_v30 }
 0x1b0   :  { %v285_v37 = vpop.f32.mrf.mxu0 }
 0x1b1   :  { %v286_v38 = vadd.f32 %v396_v36, %v285_v37 }
 0x1b3   :  { %v288_v39 = vmax.f32 %v286_v38, 0.0 }
 0x1b5   :  { %384 = vmatmul.msk.f32.vlgmr.msrb.gmra.mxu1 %vm232_vm2, %v288_v39  ;;  %385 = vmatmul.msk.f32.vlgmr.msrb.gmra.mxu2 %vm232_vm2, %v288_v39 }
 0x232   :  { %v317_v41 = vpop.f32.mrf.mxu1 }
 0x233   :  { %v318_v42 = vadd.f32 %v397_v40, %v317_v41 }
 0x235   :  { %365 = vst.msk [vmem:[%s756_s15] sm:$0xff] %vm364_vm3, %v318_v42  ;;  %s761_s15 = sld [smem:[#allocation17_spill]] }
 0x238   :  { %v345_v44 = vpop.f32.mrf.mxu2 }
 0x239   :  { %v346_v45 = vadd.f32 %v398_v43, %v345_v44 }
 0x23b   :  { %v349_v46 = vand.u32 2147483647, %v346_v45  ;;  %v348_v57 = vmax.f32 %v346_v45, 0.0 }
 0x23d   :  { %v350_v47 = vsub.f32 0.0, %v349_v46 }
 0x23f   :  { %v351_v48 = vmul.f32 1.442695, %v350_v47 }
 0x241   :  { %399 = vpow2.f32 %v351_v48 }
 0x247   :  { %v400_v49 = vpop.eup %399 }
 0x248   :  { %v353_v50 = vadd.f32 1.0, %v400_v49  ;;  %v356_v51 = vmul.f32 -0.5, %v400_v49  ;;  %v359_v53 = vand.u32 2147483647, %v400_v49 }
 0x24a   :  { %401 = vlog2.f32 %v353_v50  ;;  %v357_v52 = vadd.f32 1.0, %v356_v51  ;;  %vm360_vm4 = vcmp.lt.f32.partialorder %v359_v53, 0.0004427343 }
 0x24c   :  { %v358_v56 = vmul.f32 %v400_v49, %v357_v52 }
 0x250   :  { %v402_v54 = vpop.eup %401 }
 0x251   :  { %v355_v55 = vmul.f32 0.6931472, %v402_v54 }
 0x253   :  { %v361_v58 = vsel %vm360_vm4, %v358_v56, %v355_v55 }
 0x254   :  { %v362_v59 = vadd.f32 %v361_v58, %v348_v57 }
 0x256   :  { %v363_v60 = vadd.f32 0.1, %v362_v59 }
 0x258   :  { %366 = vst.msk [vmem:[%s761_s15] sm:$0xff] %vm364_vm3, %v363_v60 }
 0x259   :  { %375 = vsyncpa [#allocation3], 1 }
 0x25a   :  { %376 = vsyncpa [#allocation5], 1 }
 0x25b   :  { %377 = vsyncpa [#allocation8], 1 }
 0x25c   :  { %378 = vsyncpa [#allocation11], 1 }

</bundles_post_ra>
